<compile_context>
chip_gen: v5e
topology: v5e:2x2
jax: 0.10.0
libtpu: 0.0.40
codegen_flags: <defaults>
</compile_context>

<pallas_src>
import jax
import jax.numpy as jnp
from jax.experimental import pallas as pl
from jax.experimental.pallas import tpu as pltpu

HIDDEN = 30  # fixed by the module definition


def _round_up(x, m):
    return (x + m - 1) // m * m


def _choose_batch_tile(batch, k):
    """Rows per grid step, budgeted against scoped VMEM (v7x has half of v5e/v6e)."""
    # ~4 MiB per input tile; the pipeline double-buffers it -> well under 32 MiB.
    budget_rows = max(128, (4 * 1024 * 1024) // (4 * k))
    if batch <= 256:
        return _round_up(batch, 8)              # single tile, no grid overhead
    tb = min(1024, budget_rows, _round_up(batch, 128))
    return max(128, (tb // 128) * 128)          # lane-dense multiple-of-128 rows


def _critic_kernel(x_ref, w_ref, wc_ref, bc_ref, o_ref):
    # Fused hidden layer: one MXU matmul ([states|actions|1] @ [Ws;Wa;bias]).
    h = jnp.dot(x_ref[...], w_ref[...], preferred_element_type=jnp.float32)
    h = jnp.maximum(h, 0.0)                                    # ReLU (VPU)
    # 30 -> 1 head on VPU mul + cross-lane reduce (XLU); MXU stays single-pass.
    val = jnp.sum(h * wc_ref[...], axis=-1) + bc_ref[0]        # (TB,)
    o_ref[...] = val[None, :].astype(o_ref.dtype)              # lane-dense (1, TB)


def critic_net_forward(states, actions, ws, wa, bias, wc, bc,
                       *, compute_dtype=jnp.float32):
    """states: (B, state_len), actions: (B, action_len) -> (B, 1).

    ws: (state_len, 30), wa: (action_len, 30)  (pre-transposed Linear weights)
    bias: (30,), wc: (30, 1), bc: (1,)
    compute_dtype=jnp.bfloat16 halves HBM bytes / MXU passes (biggest win on
    v5e); accumulation stays float32 either way.
    """
    B = states.shape[0]
    K = states.shape[1] + actions.shape[1] + 1  # +1: ones column carries the bias

    # Fuse inputs & hidden-layer params in the wrapper (pure layout plumbing).
    x = jnp.concatenate([states, actions, jnp.ones((B, 1), states.dtype)], axis=1)
    w = jnp.concatenate([ws, wa, bias.reshape(1, HIDDEN)], axis=0)
    x = x.astype(compute_dtype)
    w = w.astype(compute_dtype)
    wc_row = wc.reshape(1, HIDDEN).astype(jnp.float32)
    bc_s = bc.reshape(1).astype(jnp.float32)

    tb = _choose_batch_tile(B, K)
    b_pad = _round_up(B, tb)
    if b_pad != B:
        x = jnp.pad(x, ((0, b_pad - B), (0, 0)))
    grid = (b_pad // tb,)

    out = pl.pallas_call(
        _critic_kernel,
        out_shape=jax.ShapeDtypeStruct((grid[0], tb), jnp.float32),
        grid=grid,
        in_specs=[
            pl.BlockSpec((tb, K), lambda i: (i, 0)),            # batch tile
            pl.BlockSpec((K, HIDDEN), lambda i: (0, 0)),        # resident fused weight
            pl.BlockSpec((1, HIDDEN), lambda i: (0, 0)),        # resident wc row
            pl.BlockSpec(memory_space=pltpu.MemorySpace.SMEM),  # bc scalar (no VMEM tile)
        ],
        out_specs=pl.BlockSpec((1, tb), lambda i: (i, 0)),      # lane-dense rows
        compiler_params=pltpu.CompilerParams(
            dimension_semantics=("parallel",)),                 # shards across v7x's 2 TCs
    )(x, w, wc_row, bc_s)

    return out.reshape(b_pad, 1)[:B]


def _reference(states, actions, ws, wa, bias, wc, bc):
    h = jnp.maximum(states @ ws + actions @ wa + bias, 0.0)
    return h @ wc + bc


if __name__ == "__main__":
    key = jax.random.PRNGKey(0)
    B, STATE_LEN, ACTION_LEN = 8, 16, 4

    ks = jax.random.split(key, 7)
    # Deterministic parameter init (PyTorch-Linear-style uniform bounds),
    # stored as (in, out) so no transpose is needed in the kernel.
    ws = jax.random.uniform(ks[0], (STATE_LEN, HIDDEN), jnp.float32,
                            -1.0 / STATE_LEN ** 0.5, 1.0 / STATE_LEN ** 0.5)
    wa = jax.random.uniform(ks[1], (ACTION_LEN, HIDDEN), jnp.float32,
                            -1.0 / ACTION_LEN ** 0.5, 1.0 / ACTION_LEN ** 0.5)
    # Module's `self.bias` is an uninitialized Parameter in PyTorch; give it a
    # deterministic value here.
    bias = jax.random.uniform(ks[2], (HIDDEN,), jnp.float32, -0.1, 0.1)
    wc = jax.random.uniform(ks[3], (HIDDEN, 1), jnp.float32,
                            -1.0 / HIDDEN ** 0.5, 1.0 / HIDDEN ** 0.5)
    bc = jax.random.uniform(ks[4], (1,), jnp.float32,
                            -1.0 / HIDDEN ** 0.5, 1.0 / HIDDEN ** 0.5)

    states = jax.random.normal(ks[5], (B, STATE_LEN), jnp.float32)
    actions = jax.random.normal(ks[6], (B, ACTION_LEN), jnp.float32)

    out = critic_net_forward(states, actions, ws, wa, bias, wc, bc)
    out = jax.block_until_ready(out)

    ref = _reference(states, actions, ws, wa, bias, wc, bc)
    assert out.shape == (B, 1)
    assert jnp.allclose(out, ref, atol=1e-5, rtol=1e-5)
    print("KERNEL_OK")
</pallas_src>

<mosaic_0001>
module attributes {stable_mosaic.version = 11 : i64} {
  func.func @_critic_kernel(%arg0: i32, %arg1: memref<8x21xf32, #tpu.memory_space<vmem>>, %arg2: memref<21x30xf32, #tpu.memory_space<vmem>>, %arg3: memref<1x30xf32, #tpu.memory_space<vmem>>, %arg4: memref<1xf32, #tpu.memory_space<smem>>, %arg5: memref<1x8xf32, #tpu.memory_space<vmem>>) attributes {dimension_semantics = [#tpu.dimension_semantics<parallel>], iteration_bounds = array<i64: 1>, scalar_prefetch = 0 : i64, scratch_operands = 0 : i64, tpu.core_type = #tpu.core_type<tc>, window_params = [{transform_indices = @transform_0, window_bounds = array<i64: 8, 21>}, {pipeline_mode = #tpu.pipeline_mode<synchronous>, transform_indices = @transform_1, window_bounds = array<i64: 21, 30>}, {pipeline_mode = #tpu.pipeline_mode<synchronous>, transform_indices = @transform_2, window_bounds = array<i64: 1, 30>}, {transform_indices = @transform_3, window_bounds = array<i64: 1>}, {transform_indices = @transform_4, window_bounds = array<i64: 1, 8>}]} {
    %c0 = arith.constant 0 : index
    %c0_0 = arith.constant 0 : index
    %0 = vector.load %arg1[%c0, %c0_0] : memref<8x21xf32, #tpu.memory_space<vmem>>, vector<8x21xf32>
    %c0_1 = arith.constant 0 : index
    %c0_2 = arith.constant 0 : index
    %1 = vector.load %arg2[%c0_1, %c0_2] : memref<21x30xf32, #tpu.memory_space<vmem>>, vector<21x30xf32>
    %cst = arith.constant dense<0.000000e+00> : vector<8x30xf32>
    %2 = tpu.matmul %0, %1, %cst {dimension_numbers = #tpu.dot_dimension_numbers<[1], [0], [0], [1], [0, 0, 1, 1], [], []>} : vector<8x21xf32>, vector<21x30xf32>, vector<8x30xf32> -> vector<8x30xf32>
    %cst_3 = arith.constant 0.000000e+00 : f32
    %3 = vector.broadcast %cst_3 : f32 to vector<8x30xf32>
    %4 = arith.maximumf %2, %3 : vector<8x30xf32>
    %c0_4 = arith.constant 0 : index
    %c0_5 = arith.constant 0 : index
    %5 = vector.load %arg3[%c0_4, %c0_5] : memref<1x30xf32, #tpu.memory_space<vmem>>, vector<1x30xf32>
    %6 = vector.broadcast %5 : vector<1x30xf32> to vector<8x30xf32>
    %7 = arith.mulf %4, %6 : vector<8x30xf32>
    %cst_6 = arith.constant dense<0.000000e+00> : vector<8xf32>
    %8 = vector.multi_reduction <add>, %7, %cst_6 [1] : vector<8x30xf32> to vector<8xf32>
    %c0_7 = arith.constant 0 : index
    %9 = memref.load %arg4[%c0_7] : memref<1xf32, #tpu.memory_space<smem>>
    %10 = vector.broadcast %9 : f32 to vector<8xf32>
    %11 = arith.addf %8, %10 : vector<8xf32>
    %12 = vector.shape_cast %11 : vector<8xf32> to vector<1x8xf32>
    %c0_8 = arith.constant 0 : index
    %c0_9 = arith.constant 0 : index
    %13 = vector.load %arg5[%c0_8, %c0_9] : memref<1x8xf32, #tpu.memory_space<vmem>>, vector<1x8xf32>
    tpu.vector_store %arg5[%c0_8, %c0_9], %12 {strides = array<i32>} : memref<1x8xf32, #tpu.memory_space<vmem>>, vector<1x8xf32>,
    return
  }
  func.func @transform_0(%arg0: i32) -> (i32, i32) {
    %c0_i32 = arith.constant 0 : i32
    %c0_i32_0 = arith.constant 0 : i32
    return %arg0, %c0_i32 : i32, i32
  }
  func.func @transform_1(%arg0: i32) -> (i32, i32) {
    %c0_i32 = arith.constant 0 : i32
    %c0_i32_0 = arith.constant 0 : i32
    %c0_i32_1 = arith.constant 0 : i32
    return %c0_i32, %c0_i32_0 : i32, i32
  }
  func.func @transform_2(%arg0: i32) -> (i32, i32) {
    %c0_i32 = arith.constant 0 : i32
    %c0_i32_0 = arith.constant 0 : i32
    %c0_i32_1 = arith.constant 0 : i32
    return %c0_i32, %c0_i32_0 : i32, i32
  }
  func.func @transform_3(%arg0: i32) -> i32 {
    %c0_i32 = arith.constant 0 : i32
    %c0_i32_0 = arith.constant 0 : i32
    return %c0_i32 : i32
  }
  func.func @transform_4(%arg0: i32) -> (i32, i32) {
    %c0_i32 = arith.constant 0 : i32
    %c0_i32_0 = arith.constant 0 : i32
    return %arg0, %c0_i32 : i32, i32
  }
}

</mosaic_0001>

<bundles_post_ra>
// kernel: tpu_custom_call.1
= control target key start
LH: loop header
LB: loop body
LE: loop exit
PB: predicated region body
PF: predicated region fallthrough
CT: control target
= control target key end

     0   :  { %10 = vsyncpa [#allocation4], 0  ;;  %s250_s0 = inlined_call_operand.hbm [shape: f32[8,21], index: 0, kind: input, shape index: {}]   ;;  %s251_s1 = inlined_call_operand.hbm [shape: f32[21,30], index: 1, kind: input, shape index: {}]   ;;  %s252_s2 = inlined_call_operand.vmem [shape: f32[1,30], index: 2, kind: input, shape index: {}]   ;;  %s253_s3 = inlined_call_operand.<no memory space> [shape: f32[1], index: 3, kind: input, shape index: {}]   ;;  %s254_s4 = inlined_call_operand.hbm [shape: f32[1,8], index: 4, kind: output, shape index: {}]  }
   0x1   :  { %11 = vsyncpa [#allocation7], 0 }
   0x2   :  { %12 = vsyncpa [#allocation5], 0  ;;  %s18_s17 = sshll.u32 %s250_s0, 4  ;;  %s205_s18 = smov [#allocation3]   ;;  %s19_s17 = int_to_ptr.hbm [resolvable:$true] %s18_s17 }
   0x3   :  { %s20_s19 = sshll.u32 %s205_s18, 4  ;;  %s28_s22 = sshll.u32 %s251_s1, 4  ;;  %s21_s19 = int_to_ptr.vmem [resolvable:$true] %s20_s19  ;;  %s29_s22 = int_to_ptr.hbm [resolvable:$true] %s28_s22 }
   0x4   :  { %23 = dma.hbm_to_vmem [thread:$0]  %s19_s17, 128, %s21_s19, [#allocation4]  }
   0x5   :  { %s206_s23 = smov [#allocation6]   ;;  %s207_s25 = smov 128  }
   0x6   :  { %s30_s24 = sshll.u32 %s206_s23, 4  ;;  %s208_s26 = smov 8   ;;  %s31_s24 = int_to_ptr.vmem [resolvable:$true] %s30_s24 }
   0x7   :  { %36 = dma.hbm_to_vmem [thread:$0]  %s29_s22, 384, %s31_s24, [#allocation7], %s207_s25, %s207_s25, %s208_s26  }
   0x8   :  { %199 = dma.done.wait [#allocation4], 128  }
   0x9   :  { %200 = vsyncadd [#allocation4], 4294967168 }
   0xa   :  { %201 = dma.done.wait [#allocation7], 384  }
   0xb   :  { %202 = vsyncadd [#allocation7], 4294966912  ;;  %vm57_vm0 = vcmask 1044480   ;;  %v52_v0 = vld [vmem:[#allocation6 + $0x10] sm:$0x1f]  ;;  %v51_v1 = vld [vmem:[#allocation6 + $0x8] sm:$0xff]  ;;  %v95_v9 = vlaneseq  ;;  %v92_v10 = vstv %s253_s3 }
   0xc   :  { %119 = vmatpush.msk.msra.mxu0 %vm57_vm0, %v52_v0  ;;  %v50_v2 = vld [vmem:[#allocation6] sm:$0xff]  ;;  %v49_v3 = vld [vmem:[#allocation3] sm:$0xff]  ;;  %vm53_vm1 = vcmask 171008   ;;  %vm87_vm2 = vcmask 244736   ;;  %s209_s29 = smov [#allocation8]   ;;  %s108_s7 = sshll.u32 %s254_s4, 4  ;;  %s109_s7 = int_to_ptr.hbm [resolvable:$true] %s108_s7 }
   0xd   :  { %v126_v4 = vld [vmem:[%s252_s2] ss:$0 sm:$0xff]  ;;  %v96_v11 = vand.u32 127, %v95_v9  ;;  %s106_s30 = sshll.u32 %s209_s29, 4  ;;  %vm99_vm3 = vcmask 57344   ;;  %s107_s30 = int_to_ptr.vmem [resolvable:$true] %s106_s30 }
   0xe   :  { %75 = vmatpush.msra.mxu0 %v51_v1 }
  0x10   :  { %76 = vmatpush.msra.mxu0 %v50_v2 }
  0x11   :  { %120 = vmatmul.msk.f32.vlgmr.msra.gmra.mxu0 %vm53_vm1, %v49_v3 }
  0x8e   :  { %v78_v5 = vpop.f32.mrf.mxu0 }
  0x8f   :  { %v81_v6 = vmax.f32 %v78_v5, 0.0 }
  0x91   :  { %v86_v7 = vmul.f32 %v126_v4, %v81_v6 }
  0x93   :  { %v88_v8 = vsel %vm87_vm2, %v86_v7, 0.0 }
  0x94   :  { %89 = vadd.xlane.f32.xlu0 %v88_v8 }
 0x107   :  { %v90_v12 = vpop.xlane.xlu0 %89 }
 0x108   :  { %v93_v13 = vadd.f32 %v92_v10, %v90_v12 }
 0x10a   :  { %v97_v14 = vperm.slane %v93_v13, %v96_v11 }
 0x10c   :  { %100 = vst.msk [vmem:[#allocation8] sm:$0x1] %vm99_vm3, %v97_v14 }
 0x10d   :  { %111 = dma.vmem_to_hbm [thread:$0]  %s107_s30, 16, %s109_s7, [#allocation5]  }
 0x10e   :  { %203 = dma.done.wait [#allocation5], 16  }
 0x10f   :  { %204 = vsyncadd [#allocation5], 4294967280 }
 0x110   :  { %116 = vsyncpa [#allocation4], 1 }
 0x111   :  { %117 = vsyncpa [#allocation7], 1 }
 0x112   :  { %118 = vsyncpa [#allocation5], 1 }

</bundles_post_ra>
